<compile_context>
chip_gen: v6e
topology: v6e:2x2x1
jax: 0.10.0
libtpu: 0.0.40
codegen_flags: <defaults>
</compile_context>

<pallas_src>
import math

import numpy as np
import jax
import jax.numpy as jnp
from jax.experimental import pallas as pl
from jax.experimental.pallas import tpu as pltpu


def make_pe_table(d_model: int, max_len: int = 5000, dtype=jnp.float32) -> jnp.ndarray:
    """Deterministic sinusoidal positional-encoding table, shape (max_len, d_model).

    Equal to the PyTorch module's buffer squeezed over its singleton batch axis.
    """
    position = jnp.arange(0, max_len, dtype=jnp.float32)[:, None]            # (max_len, 1)
    div_term = jnp.exp(
        jnp.arange(0, d_model, 2, dtype=jnp.float32) * (-math.log(10000.0) / d_model)
    )                                                                         # (d_model/2,)
    pe = jnp.zeros((max_len, d_model), dtype=jnp.float32)
    pe = pe.at[:, 0::2].set(jnp.sin(position * div_term))
    pe = pe.at[:, 1::2].set(jnp.cos(position * div_term))
    return pe.astype(dtype)


def _pe_add_kernel(x_ref, pe_ref, o_ref):
    # 3-D path: x_ref (TS, B, D), pe_ref (TS, 1, D) -> broadcast add over batch.
    # 2-D path: x_ref (TS, D),    pe_ref (TS, D)    -> plain add.
    o_ref[...] = x_ref[...] + pe_ref[...]


def _choose_seq_tile(S: int, B: int, D: int, itemsize: int) -> int:
    """Largest S-tile that keeps the double-buffered working set ~<= 16 MiB.

    Per grid step the pipeline holds (x_in tile + out tile + pe tile) and double-buffers
    each; 16 MiB leaves headroom inside v7x's 32 MiB scoped VMEM (64 MiB physical).
    """
    budget_bytes = 16 * 1024 * 1024
    bytes_per_seq_row = (2 * B + 1) * D * itemsize        # x_in + out + pe per seq row
    ts = max(1, budget_bytes // (2 * bytes_per_seq_row))  # 2 = double buffering
    ts = min(ts, S)
    if ts >= 8:
        ts -= ts % 8                                      # align tiles for clean DMA
    return max(ts, 1)


def positional_encoding_forward(x: jnp.ndarray, pe_table: jnp.ndarray) -> jnp.ndarray:
    """x: (S, B, D); pe_table: (max_len, D).  Returns x + pe_table[:S, None, :]."""
    S, B, D = x.shape
    max_len, d_model = pe_table.shape
    if d_model != D:
        raise ValueError(f"d_model mismatch: x has {D}, pe table has {d_model}")
    if S > max_len:
        raise ValueError(f"seq_len {S} exceeds positional table max_len {max_len}")

    # Cast once in the wrapper (no-op for f32); avoids a per-tile VPU cast in the kernel
    # and halves pe HBM read traffic when activations are bf16.
    if pe_table.dtype != x.dtype:
        pe_table = pe_table.astype(x.dtype)

    ts = _choose_seq_tile(S, B, D, jnp.dtype(x.dtype).itemsize)
    grid = (pl.cdiv(S, ts),)
    compiler_params = pltpu.CompilerParams(dimension_semantics=("parallel",))

    if B == 1:
        # Squeeze the singleton batch: sublane dim becomes the (multiple-of-8) S tile,
        # lane dim is D (lane-dense unmasked stores whenever D % 128 == 0).
        out2d = pl.pallas_call(
            _pe_add_kernel,
            out_shape=jax.ShapeDtypeStruct((S, D), x.dtype),
            grid=grid,
            in_specs=[
                pl.BlockSpec((ts, D), lambda i: (i, 0)),      # x tile
                pl.BlockSpec((ts, D), lambda i: (i, 0)),      # pe rows streamed per tile
            ],
            out_specs=pl.BlockSpec((ts, D), lambda i: (i, 0)),
            compiler_params=compiler_params,
        )(x.reshape(S, D), pe_table)
        return out2d.reshape(S, 1, D)

    # General batched path: keep (S, B, D); pe is presented as (max_len, 1, D)
    # (a free metadata reshape) and the broadcast over B happens inside the kernel.
    pe3 = pe_table[:, None, :]
    return pl.pallas_call(
        _pe_add_kernel,
        out_shape=jax.ShapeDtypeStruct((S, B, D), x.dtype),
        grid=grid,
        in_specs=[
            pl.BlockSpec((ts, B, D), lambda i: (i, 0, 0)),    # x tile
            pl.BlockSpec((ts, 1, D), lambda i: (i, 0, 0)),    # matching pe rows
        ],
        out_specs=pl.BlockSpec((ts, B, D), lambda i: (i, 0, 0)),
        compiler_params=compiler_params,
    )(x, pe3)


if __name__ == "__main__":
    d_model = 32
    max_len = 64   # small deterministic table (module default is 5000; shape-compatible)
    seq = 8
    batch = 2

    key = jax.random.PRNGKey(0)
    x = jax.random.normal(key, (seq, batch, d_model), dtype=jnp.float32)
    pe = make_pe_table(d_model, max_len)

    out = jax.block_until_ready(positional_encoding_forward(x, pe))

    # Correctness check against a pure-JAX reference of the PyTorch forward.
    ref = x + pe[:seq][:, None, :]
    np.testing.assert_allclose(np.asarray(out), np.asarray(ref), rtol=1e-6, atol=1e-6)

    # Also exercise the batch==1 (2-D, sublane-dense) fast path.
    x1 = jax.random.normal(jax.random.PRNGKey(0), (seq, 1, d_model), dtype=jnp.float32)
    out1 = jax.block_until_ready(positional_encoding_forward(x1, pe))
    ref1 = x1 + pe[:seq][:, None, :]
    np.testing.assert_allclose(np.asarray(out1), np.asarray(ref1), rtol=1e-6, atol=1e-6)

    print("KERNEL_OK")
</pallas_src>

<mosaic_0001>
module attributes {stable_mosaic.version = 11 : i64} {
  func.func @_pe_add_kernel(%arg0: i32, %arg1: memref<8x2x32xf32, #tpu.memory_space<vmem>>, %arg2: memref<8x1x32xf32, #tpu.memory_space<vmem>>, %arg3: memref<8x2x32xf32, #tpu.memory_space<vmem>>) attributes {dimension_semantics = [#tpu.dimension_semantics<parallel>], iteration_bounds = array<i64: 1>, scalar_prefetch = 0 : i64, scratch_operands = 0 : i64, tpu.core_type = #tpu.core_type<tc>, window_params = [{transform_indices = @transform_0, window_bounds = array<i64: 8, 2, 32>}, {transform_indices = @transform_1, window_bounds = array<i64: 8, 1, 32>}, {transform_indices = @transform_2, window_bounds = array<i64: 8, 2, 32>}]} {
    %c0 = arith.constant 0 : index
    %c0_0 = arith.constant 0 : index
    %c0_1 = arith.constant 0 : index
    %0 = vector.load %arg1[%c0, %c0_0, %c0_1] : memref<8x2x32xf32, #tpu.memory_space<vmem>>, vector<8x2x32xf32>
    %c0_2 = arith.constant 0 : index
    %c0_3 = arith.constant 0 : index
    %c0_4 = arith.constant 0 : index
    %1 = vector.load %arg2[%c0_2, %c0_3, %c0_4] : memref<8x1x32xf32, #tpu.memory_space<vmem>>, vector<8x1x32xf32>
    %2 = vector.broadcast %1 : vector<8x1x32xf32> to vector<8x2x32xf32>
    %3 = arith.addf %0, %2 : vector<8x2x32xf32>
    %c0_5 = arith.constant 0 : index
    %c0_6 = arith.constant 0 : index
    %c0_7 = arith.constant 0 : index
    %4 = vector.load %arg3[%c0_5, %c0_6, %c0_7] : memref<8x2x32xf32, #tpu.memory_space<vmem>>, vector<8x2x32xf32>
    tpu.vector_store %arg3[%c0_5, %c0_6, %c0_7], %3 {strides = array<i32>} : memref<8x2x32xf32, #tpu.memory_space<vmem>>, vector<8x2x32xf32>,
    return
  }
  func.func @transform_0(%arg0: i32) -> (i32, i32, i32) {
    %c0_i32 = arith.constant 0 : i32
    %c0_i32_0 = arith.constant 0 : i32
    %c0_i32_1 = arith.constant 0 : i32
    return %arg0, %c0_i32, %c0_i32_0 : i32, i32, i32
  }
  func.func @transform_1(%arg0: i32) -> (i32, i32, i32) {
    %c0_i32 = arith.constant 0 : i32
    %c0_i32_0 = arith.constant 0 : i32
    %c0_i32_1 = arith.constant 0 : i32
    return %arg0, %c0_i32, %c0_i32_0 : i32, i32, i32
  }
  func.func @transform_2(%arg0: i32) -> (i32, i32, i32) {
    %c0_i32 = arith.constant 0 : i32
    %c0_i32_0 = arith.constant 0 : i32
    %c0_i32_1 = arith.constant 0 : i32
    return %arg0, %c0_i32, %c0_i32_0 : i32, i32, i32
  }
}

</mosaic_0001>

<bundles_post_ra>
// kernel: tpu_custom_call.1
= control target key start
LH: loop header
LB: loop body
LE: loop exit
PB: predicated region body
PF: predicated region fallthrough
CT: control target
= control target key end

     0   :  { %vm84_vm0 = vcmask 254976   ;;  %s219_s0 = inlined_call_operand.vmem [shape: f32[8,2,32], index: 0, kind: input, shape index: {}]   ;;  %s220_s1 = inlined_call_operand.vmem [shape: f32[64,1,32], index: 1, kind: input, shape index: {}]   ;;  %s221_s2 = inlined_call_operand.hbm [shape: f32[8,2,32], index: 2, kind: output, shape index: {}]  }
   0x1   :  { %v12_v0 = vld [vmem:[%s219_s0] sm:$0x3]  ;;  %v13_v3 = vld [vmem:[%s219_s0 + $0x2] sm:$0x3]  ;;  %v14_v5 = vld [vmem:[%s219_s0 + $0x4] sm:$0x3] }
   0x2   :  { %v109_v1 = vld [vmem:[%s220_s1] ss:$0 sm:$0xff]  ;;  %v110_v4 = vld [vmem:[%s220_s1 + $0x1] ss:$0 sm:$0xff]  ;;  %v111_v7 = vld [vmem:[%s220_s1 + $0x2] ss:$0 sm:$0xff] }
   0x3   :  { %v76_v2 = vadd.f32 %v109_v1, %v12_v0  ;;  %v77_v6 = vadd.f32 %v110_v4, %v13_v3  ;;  %v15_v8 = vld [vmem:[%s219_s0 + $0x6] sm:$0x3]  ;;  %v112_v9 = vld [vmem:[%s220_s1 + $0x3] ss:$0 sm:$0xff]  ;;  %v78_v10 = vadd.f32 %v111_v7, %v14_v5  ;;  %v16_v12 = vld [vmem:[%s219_s0 + $0x8] sm:$0x3] }
   0x4   :  { %v79_v11 = vadd.f32 %v112_v9, %v15_v8  ;;  %v113_v13 = vld [vmem:[%s220_s1 + $0x4] ss:$0 sm:$0xff]  ;;  %v17_v14 = vld [vmem:[%s219_s0 + $0xa] sm:$0x3]  ;;  %v114_v16 = vld [vmem:[%s220_s1 + $0x5] ss:$0 sm:$0xff] }
   0x5   :  { %85 = vst.msk [vmem:[#allocation2] sm:$0x3] %vm84_vm0, %v76_v2  ;;  %86 = vst.msk [vmem:[#allocation2 + $0x2] sm:$0x3] %vm84_vm0, %v77_v6  ;;  %v80_v15 = vadd.f32 %v113_v13, %v16_v12  ;;  %v18_v17 = vld [vmem:[%s219_s0 + $0xc] sm:$0x3]  ;;  %v81_v19 = vadd.f32 %v114_v16, %v17_v14 }
   0x6   :  { %v115_v18 = vld [vmem:[%s220_s1 + $0x6] ss:$0 sm:$0xff]  ;;  %87 = vst.msk [vmem:[#allocation2 + $0x4] sm:$0x3] %vm84_vm0, %v78_v10  ;;  %88 = vst.msk [vmem:[#allocation2 + $0x6] sm:$0x3] %vm84_vm0, %v79_v11 }
   0x7   :  { %v82_v20 = vadd.f32 %v115_v18, %v18_v17  ;;  %v19_v21 = vld [vmem:[%s219_s0 + $0xe] sm:$0x3]  ;;  %v116_v22 = vld [vmem:[%s220_s1 + $0x7] ss:$0 sm:$0xff] }
   0x8   :  { %7 = vsyncpa [#allocation3], 0  ;;  %89 = vst.msk [vmem:[#allocation2 + $0x8] sm:$0x3] %vm84_vm0, %v80_v15  ;;  %v83_v23 = vadd.f32 %v116_v22, %v19_v21  ;;  %s142_s13 = smov [#allocation2]  }
   0x9   :  { %s98_s14 = sshll.u32 %s142_s13, 4  ;;  %90 = vst.msk [vmem:[#allocation2 + $0xa] sm:$0x3] %vm84_vm0, %v81_v19  ;;  %91 = vst.msk [vmem:[#allocation2 + $0xc] sm:$0x3] %vm84_vm0, %v82_v20  ;;  %s99_s14 = int_to_ptr.vmem [resolvable:$true] %s98_s14 }
   0xa   :  { %92 = vst.msk [vmem:[#allocation2 + $0xe] sm:$0x3] %vm84_vm0, %v83_v23  ;;  %s120_s15 = scalar_lea.vmem %s99_s14, 256  ;;  %p125_p1 = scmp.lt.s32.totalorder %s99_s14, %s99_s14 }
   0xb   :  { %p121_p0 = scmp.ne.s32.totalorder %s99_s14, %s120_s15  ;;  %p126_p2 = scmp.lt.s32.totalorder %s120_s15, %s120_s15 }
   0xd   :  { %p127_p3 = por %p126_p2, %p125_p1 }
   0xf   :  { %p128_p4 = pnand %p127_p3, %p121_p0 }
  0x11   :  { %131 = shalt.err (!%p128_p4)
}
  0x12   :  { %s143_s0 = smov 32   ;;  %s144_s1 = smov 2  }
  0x13   :  { %104 = dma.vmem_to_hbm [thread:$0]  %s99_s14, 256, %s221_s2, [#allocation3], %s143_s0, %s143_s0, %s144_s1  }
  0x14   :  { %140 = dma.done.wait [#allocation3], 256  }
  0x15   :  { %141 = vsyncadd [#allocation3], 4294967040 }
  0x16   :  { %108 = vsyncpa [#allocation3], 1 }

</bundles_post_ra>
